<compile_context>
chip_gen: v7x
topology: tpu7x:2x2x1
jax: 0.10.0
libtpu: 0.0.40
codegen_flags: <defaults>
</compile_context>

<pallas_src>
import functools

import jax
import jax.numpy as jnp
from jax import lax
from jax.experimental import pallas as pl
from jax.experimental.pallas import tpu as pltpu

EPS = 1e-5
_LANE = 128
_MOD_DTYPE = jnp.bfloat16          # MXU-native dtype for the modulation matmuls
_VMEM_LIMIT_BYTES = 32 << 20       # <= physical on all gens; raises v5e's 16 MiB default
_TILE_VMEM_BUDGET = 12 << 20       # accounted footprint target when picking tile_n
_MAX_TILE_ROWS = 1024              # 512-1024 row tiles already sit at ~85% HBM roofline


# ---------------------------------------------------------------------------
# Kernels
# ---------------------------------------------------------------------------
def _ln_rows(x, gamma, beta, seg, inv_c):
    """LayerNorm over per-point feature segments, f32 statistics.

    x: (TN, L) f32.
      seg is None  -> one point per row (L == C), plain lane reduce.
      seg (L, L)   -> block-diagonal ones matrix; segmented mean/var via one
                      f32 matmul each (keeps everything 128-lane dense for small C).
    """
    if seg is None:
        mean = jnp.mean(x, axis=-1, keepdims=True)
        xc = x - mean
        var = jnp.mean(xc * xc, axis=-1, keepdims=True)
    else:
        mean = jnp.dot(x, seg, preferred_element_type=jnp.float32) * inv_c
        xc = x - mean
        var = jnp.dot(xc * xc, seg, preferred_element_type=jnp.float32) * inv_c
    return xc * lax.rsqrt(var + EPS) * gamma + beta


def _adaptive_kernel(*refs, inv_c, packed):
    if packed:
        (gamma_ref, beta_ref, wsh_ref, wsc_ref, bsh_ref, bsc_ref, seg_ref,
         feat_ref, ctx_ref, out_ref) = refs
        seg = seg_ref[...]
    else:
        (gamma_ref, beta_ref, wsh_ref, wsc_ref, bsh_ref, bsc_ref,
         feat_ref, ctx_ref, out_ref) = refs
        seg = None

    x = feat_ref[...].astype(jnp.float32)
    y = _ln_rows(x, gamma_ref[...], beta_ref[...], seg, inv_c)

    # SiLU on the VPU/EUP in f32, then feed the MXU bf16 (f32 accumulate).
    c = ctx_ref[...].astype(jnp.float32)
    s = (c * jax.nn.sigmoid(c)).astype(wsh_ref.dtype)
    shift = jnp.dot(s, wsh_ref[...], preferred_element_type=jnp.float32) + bsh_ref[...]
    scale = jnp.dot(s, wsc_ref[...], preferred_element_type=jnp.float32) + bsc_ref[...]

    out_ref[...] = (y * (1.0 + scale) + shift).astype(out_ref.dtype)


def _plain_kernel(*refs, inv_c, packed):
    if packed:
        gamma_ref, beta_ref, seg_ref, feat_ref, out_ref = refs
        seg = seg_ref[...]
    else:
        gamma_ref, beta_ref, feat_ref, out_ref = refs
        seg = None
    x = feat_ref[...].astype(jnp.float32)
    out_ref[...] = _ln_rows(x, gamma_ref[...], beta_ref[...], seg,
                            inv_c).astype(out_ref.dtype)


# ---------------------------------------------------------------------------
# Tiling helpers
# ---------------------------------------------------------------------------
def _round_up(x, m):
    return ((x + m - 1) // m) * m


def _num_tensorcores():
    """2 TensorCores per chip on v4/v5p/v7x, else 1 (v5e/v6e)."""
    try:
        kind = jax.devices()[0].device_kind.lower()
    except Exception:  # pragma: no cover
        return 1
    for tag in ("v4", "v5p", "v7", "tpu7"):
        if tag in kind:
            return 2
    return 1


def _choose_tile_n(n_rows, per_row_bytes, fixed_bytes=0):
    """Largest row tile fitting the accounted VMEM budget, capped, and clipped so
    2-TensorCore chips get >= 2 grid steps per core (pipelining on both cores)."""
    budget = max(_TILE_VMEM_BUDGET - fixed_bytes, 1 << 20)
    tile = budget // max(per_row_bytes, 1)
    tile = min(tile, _MAX_TILE_ROWS)
    cores = _num_tensorcores()
    if cores > 1:
        tile = min(tile, _round_up(pl.cdiv(n_rows, 2 * cores), 8))
    tile = max(8, (tile // 8) * 8)
    tile = min(tile, _round_up(n_rows, 8))
    return int(tile)


def _pack_group(C):
    """Points packed per 128-lane row (lane-dense repack for small C)."""
    if C < _LANE and _LANE % C == 0:
        return _LANE // C
    return 1


def _pack_rows(x, g):
    n, c = x.shape
    n_pad = _round_up(n, g)
    if n_pad != n:
        x = jnp.pad(x, ((0, n_pad - n), (0, 0)))
    return x.reshape(n_pad // g, g * c)


def _unpack_rows(y, n, c):
    return y.reshape(-1, c)[:n]


# ---------------------------------------------------------------------------
# Parameter preprocessing (hoisted out of the per-call path)
# ---------------------------------------------------------------------------
def _prep_params(gamma, beta, w, b, C):
    g = _pack_group(C)
    p = {"g": g, "C": C}
    gamma = gamma.reshape(-1).astype(jnp.float32)
    beta = beta.reshape(-1).astype(jnp.float32)
    if g > 1:
        p["gamma"] = jnp.tile(gamma, g).reshape(1, g * C)
        p["beta"] = jnp.tile(beta, g).reshape(1, g * C)
        # block-diagonal ones matrix for the segmented LN reduce
        p["seg"] = jnp.kron(jnp.eye(g, dtype=jnp.float32),
                            jnp.ones((C, C), jnp.float32))
    else:
        p["gamma"] = gamma.reshape(1, C)
        p["beta"] = beta.reshape(1, C)
        p["seg"] = None

    if w is not None:
        w = w.astype(jnp.float32)
        b = b.reshape(-1).astype(jnp.float32)
        w_shift, w_scale = w[:, :C], w[:, C:]           # chunk(2, dim=1) order
        b_shift, b_scale = b[:C], b[C:]
        if g > 1:
            eye = jnp.eye(g, dtype=jnp.float32)
            w_shift = jnp.kron(eye, w_shift)            # (g*K, g*C) block-diagonal
            w_scale = jnp.kron(eye, w_scale)
            b_shift = jnp.tile(b_shift, g)
            b_scale = jnp.tile(b_scale, g)
        p["w_shift"] = w_shift.astype(_MOD_DTYPE)
        p["w_scale"] = w_scale.astype(_MOD_DTYPE)
        p["b_shift"] = b_shift.reshape(1, -1)
        p["b_scale"] = b_scale.reshape(1, -1)
    return p


# ---------------------------------------------------------------------------
# pallas_call wrappers
# ---------------------------------------------------------------------------
def _adaptive_call(feat, context, p, *, tile_n=None):
    N, C = feat.shape
    g = p["g"]
    packed = g > 1
    feat_in = _pack_rows(feat, g) if packed else feat
    ctx_in = _pack_rows(context, g) if packed else context
    n_rows, Lf = feat_in.shape
    Lc = ctx_in.shape[1]

    if tile_n is None:
        it_f = jnp.dtype(feat.dtype).itemsize
        it_c = jnp.dtype(context.dtype).itemsize
        w_it = jnp.dtype(p["w_shift"].dtype).itemsize
        # double-buffered streamed rows (feat in + out + ctx in) + f32 intermediates
        per_row = 2 * (2 * it_f * Lf + it_c * Lc) + 4 * (4 * Lf + 2 * Lc)
        # resident, double-buffered weight halves (+ segment matrix if packed)
        fixed = 2 * 2 * p["w_shift"].size * w_it
        if packed:
            fixed += 2 * p["seg"].size * 4
        tile_n = _choose_tile_n(n_rows, per_row, fixed)

    grid = (pl.cdiv(n_rows, tile_n),)
    const = lambda i: (0, 0)

    in_specs = [
        pl.BlockSpec((1, Lf), const),                   # gamma (tiled if packed)
        pl.BlockSpec((1, Lf), const),                   # beta
        pl.BlockSpec(p["w_shift"].shape, const),        # W_shift (block-diag if packed)
        pl.BlockSpec(p["w_scale"].shape, const),        # W_scale
        pl.BlockSpec((1, Lf), const),                   # b_shift
        pl.BlockSpec((1, Lf), const),                   # b_scale
    ]
    args = [p["gamma"], p["beta"], p["w_shift"], p["w_scale"],
            p["b_shift"], p["b_scale"]]
    if packed:
        in_specs.append(pl.BlockSpec(p["seg"].shape, const))
        args.append(p["seg"])
    in_specs += [
        pl.BlockSpec((tile_n, Lf), lambda i: (i, 0)),   # feat tile
        pl.BlockSpec((tile_n, Lc), lambda i: (i, 0)),   # context tile
    ]
    args += [feat_in, ctx_in]

    kernel = functools.partial(_adaptive_kernel, inv_c=1.0 / C, packed=packed)
    out = pl.pallas_call(
        kernel,
        out_shape=jax.ShapeDtypeStruct((n_rows, Lf), feat.dtype),
        grid_spec=pltpu.PrefetchScalarGridSpec(
            num_scalar_prefetch=0,
            grid=grid,
            in_specs=in_specs,
            out_specs=pl.BlockSpec((tile_n, Lf), lambda i: (i, 0)),
        ),
        compiler_params=pltpu.CompilerParams(
            dimension_semantics=("parallel",),
            vmem_limit_bytes=_VMEM_LIMIT_BYTES),
    )(*args)
    return _unpack_rows(out, N, C) if packed else out


def _plain_call(feat, p, *, tile_n=None):
    N, C = feat.shape
    g = p["g"]
    packed = g > 1
    feat_in = _pack_rows(feat, g) if packed else feat
    n_rows, Lf = feat_in.shape

    if tile_n is None:
        it_f = jnp.dtype(feat.dtype).itemsize
        per_row = 2 * (2 * it_f * Lf) + 4 * 3 * Lf
        fixed = 2 * p["seg"].size * 4 if packed else 0
        tile_n = _choose_tile_n(n_rows, per_row, fixed)

    grid = (pl.cdiv(n_rows, tile_n),)
    const = lambda i: (0, 0)

    in_specs = [pl.BlockSpec((1, Lf), const), pl.BlockSpec((1, Lf), const)]
    args = [p["gamma"], p["beta"]]
    if packed:
        in_specs.append(pl.BlockSpec(p["seg"].shape, const))
        args.append(p["seg"])
    in_specs.append(pl.BlockSpec((tile_n, Lf), lambda i: (i, 0)))
    args.append(feat_in)

    kernel = functools.partial(_plain_kernel, inv_c=1.0 / C, packed=packed)
    out = pl.pallas_call(
        kernel,
        out_shape=jax.ShapeDtypeStruct((n_rows, Lf), feat.dtype),
        grid_spec=pltpu.PrefetchScalarGridSpec(
            num_scalar_prefetch=0,
            grid=grid,
            in_specs=in_specs,
            out_specs=pl.BlockSpec((tile_n, Lf), lambda i: (i, 0)),
        ),
        compiler_params=pltpu.CompilerParams(
            dimension_semantics=("parallel",),
            vmem_limit_bytes=_VMEM_LIMIT_BYTES),
    )(*args)
    return _unpack_rows(out, N, C) if packed else out


def pdnorm_forward(feat, context, gamma, beta, w, b, *, tile_n=None):
    """Adaptive PDNorm (functional form; preps params on the fly)."""
    C = feat.shape[1]
    p = _prep_params(gamma, beta, w, b, C)
    return _adaptive_call(feat, context, p, tile_n=tile_n)


def layernorm_forward(feat, gamma, beta, *, tile_n=None):
    """Non-adaptive PDNorm path: per-condition LayerNorm only."""
    C = feat.shape[1]
    p = _prep_params(gamma, beta, None, None, C)
    return _plain_call(feat, p, tile_n=tile_n)


# ---------------------------------------------------------------------------
# Module
# ---------------------------------------------------------------------------
class PDNormPallas:
    """Decoupled per-condition LayerNorm + optional adaptive modulation."""

    def __init__(self, num_features, context_channels=256,
                 conditions=("ScanNet", "S3DIS", "Structured3D"),
                 decouple=True, adaptive=False, key=None):
        self.conditions = conditions
        self.decouple = decouple
        self.adaptive = adaptive
        self.num_features = num_features
        self.context_channels = context_channels

        key = jax.random.PRNGKey(42) if key is None else key
        n_norm = len(conditions) if decouple else 1
        keys = jax.random.split(key, 2 * n_norm + 2)

        # Per-condition LayerNorm affine params (perturbed from the PyTorch default
        # ones/zeros so conditions are distinguishable in the demo).
        self.gammas = [
            1.0 + 0.1 * jax.random.normal(keys[2 * i], (num_features,), jnp.float32)
            for i in range(n_norm)
        ]
        self.betas = [
            0.1 * jax.random.normal(keys[2 * i + 1], (num_features,), jnp.float32)
            for i in range(n_norm)
        ]

        if adaptive:
            # nn.Linear(context_channels, 2*num_features): U(-1/sqrt(K), 1/sqrt(K))
            bound = 1.0 / (context_channels ** 0.5)
            self.w = jax.random.uniform(keys[-2],
                                        (context_channels, 2 * num_features),
                                        jnp.float32, -bound, bound)
            self.b = jax.random.uniform(keys[-1], (2 * num_features,),
                                        jnp.float32, -bound, bound)
        else:
            self.w = None
            self.b = None

        # Hoisted per-call-invariant prep: split/pack/cast weights, gamma/beta, biases.
        self._params = [
            _prep_params(self.gammas[i], self.betas[i], self.w, self.b, num_features)
            for i in range(n_norm)
        ]

    def __call__(self, point):
        condition = point["condition"]
        if not isinstance(condition, str):
            condition = condition[0]
        if self.decouple:
            assert condition in self.conditions
            idx = self.conditions.index(condition)
        else:
            idx = 0
        p = self._params[idx]
        if self.adaptive:
            point["feat"] = _adaptive_call(point["feat"], point["context"], p)
        else:
            point["feat"] = _plain_call(point["feat"], p)
        return point


# ---------------------------------------------------------------------------
# Pure-JAX references
# ---------------------------------------------------------------------------
def _reference_ln(feat, gamma, beta):
    x = feat.astype(jnp.float32)
    mean = x.mean(-1, keepdims=True)
    var = ((x - mean) ** 2).mean(-1, keepdims=True)
    return (x - mean) / jnp.sqrt(var + EPS) * gamma + beta


def _reference_adaptive(feat, context, gamma, beta, w, b):
    y = _reference_ln(feat, gamma, beta)
    s = jax.nn.silu(context.astype(jnp.float32))
    mod = s @ w + b
    C = feat.shape[1]
    shift, scale = mod[:, :C], mod[:, C:]
    return y * (1.0 + scale) + shift


# ---------------------------------------------------------------------------
# Demo / correctness check
# ---------------------------------------------------------------------------
if __name__ == "__main__":
    key = jax.random.PRNGKey(0)
    k_feat, k_ctx, k_feat2, k_ctx2 = jax.random.split(key, 4)

    # --- small C: exercises the lane-dense packed path (C=32 -> 4 points/vreg row),
    #     ragged N (pad to a multiple of g, masked grid tail)
    N, C, K = 203, 32, 64
    feat = jax.random.normal(k_feat, (N, C), jnp.float32)
    context = jax.random.normal(k_ctx, (N, K), jnp.float32)

    mod_adaptive = PDNormPallas(num_features=C, context_channels=K,
                                conditions=("ScanNet", "S3DIS", "Structured3D"),
                                decouple=True, adaptive=True)
    point = {"feat": feat, "context": context, "condition": "S3DIS"}
    out = jax.block_until_ready(mod_adaptive(dict(point))["feat"])

    idx = mod_adaptive.conditions.index("S3DIS")
    ref = _reference_adaptive(feat, context, mod_adaptive.gammas[idx],
                              mod_adaptive.betas[idx], mod_adaptive.w,
                              mod_adaptive.b)
    assert out.shape == (N, C)
    # modulation matmul now runs bf16 on the MXU (f32 accumulate) -> widened tolerance
    assert jnp.allclose(out, ref, atol=2e-2, rtol=2e-2), "adaptive (packed) mismatch"

    # explicit small tile: multi-step grid + ragged tail over the packed rows
    out_small = jax.block_until_ready(
        pdnorm_forward(feat, context, mod_adaptive.gammas[idx],
                       mod_adaptive.betas[idx], mod_adaptive.w, mod_adaptive.b,
                       tile_n=16))
    assert jnp.allclose(out_small, ref, atol=2e-2, rtol=2e-2), "tiled mismatch"

    # --- C >= 128: exercises the unpacked kernel (aligned lanes, no repack)
    N2, C2, K2 = 100, 128, 32
    feat2 = jax.random.normal(k_feat2, (N2, C2), jnp.float32)
    context2 = jax.random.normal(k_ctx2, (N2, K2), jnp.float32)
    kg, kb, kw, kbias = jax.random.split(jax.random.PRNGKey(1), 4)
    gamma2 = 1.0 + 0.1 * jax.random.normal(kg, (C2,), jnp.float32)
    beta2 = 0.1 * jax.random.normal(kb, (C2,), jnp.float32)
    bound = 1.0 / (K2 ** 0.5)
    w2 = jax.random.uniform(kw, (K2, 2 * C2), jnp.float32, -bound, bound)
    b2 = jax.random.uniform(kbias, (2 * C2,), jnp.float32, -bound, bound)
    out2 = jax.block_until_ready(
        pdnorm_forward(feat2, context2, gamma2, beta2, w2, b2))
    ref2 = _reference_adaptive(feat2, context2, gamma2, beta2, w2, b2)
    assert jnp.allclose(out2, ref2, atol=2e-2, rtol=2e-2), "adaptive (unpacked) mismatch"

    # --- non-adaptive paths (LayerNorm-only kernels: packed and unpacked)
    mod_plain = PDNormPallas(num_features=C, context_channels=K,
                             conditions=("ScanNet", "S3DIS", "Structured3D"),
                             decouple=True, adaptive=False)
    out_plain = jax.block_until_ready(
        mod_plain({"feat": feat, "condition": "ScanNet"})["feat"])
    ref_plain = _reference_ln(feat, mod_plain.gammas[0], mod_plain.betas[0])
    assert jnp.allclose(out_plain, ref_plain, atol=1e-4, rtol=1e-4), "plain (packed) mismatch"

    out_plain2 = jax.block_until_ready(layernorm_forward(feat2, gamma2, beta2))
    ref_plain2 = _reference_ln(feat2, gamma2, beta2)
    assert jnp.allclose(out_plain2, ref_plain2, atol=1e-4, rtol=1e-4), "plain (unpacked) mismatch"

    print("KERNEL_OK")
</pallas_src>

<mosaic_0001>
module attributes {stable_mosaic.version = 11 : i64} {
  func.func @_adaptive_kernel(%arg0: i32, %arg1: memref<1x128xf32, #tpu.memory_space<vmem>>, %arg2: memref<1x128xf32, #tpu.memory_space<vmem>>, %arg3: memref<256x128xbf16, #tpu.memory_space<vmem>>, %arg4: memref<256x128xbf16, #tpu.memory_space<vmem>>, %arg5: memref<1x128xf32, #tpu.memory_space<vmem>>, %arg6: memref<1x128xf32, #tpu.memory_space<vmem>>, %arg7: memref<128x128xf32, #tpu.memory_space<vmem>>, %arg8: memref<56x128xf32, #tpu.memory_space<vmem>>, %arg9: memref<56x256xf32, #tpu.memory_space<vmem>>, %arg10: memref<56x128xf32, #tpu.memory_space<vmem>>) attributes {dimension_semantics = [#tpu.dimension_semantics<parallel>], iteration_bounds = array<i64: 1>, scalar_prefetch = 0 : i64, scratch_operands = 0 : i64, tpu.core_type = #tpu.core_type<tc>, window_params = [{pipeline_mode = #tpu.pipeline_mode<synchronous>, transform_indices = @transform_0, window_bounds = array<i64: 1, 128>}, {pipeline_mode = #tpu.pipeline_mode<synchronous>, transform_indices = @transform_1, window_bounds = array<i64: 1, 128>}, {pipeline_mode = #tpu.pipeline_mode<synchronous>, transform_indices = @transform_2, window_bounds = array<i64: 256, 128>}, {pipeline_mode = #tpu.pipeline_mode<synchronous>, transform_indices = @transform_3, window_bounds = array<i64: 256, 128>}, {pipeline_mode = #tpu.pipeline_mode<synchronous>, transform_indices = @transform_4, window_bounds = array<i64: 1, 128>}, {pipeline_mode = #tpu.pipeline_mode<synchronous>, transform_indices = @transform_5, window_bounds = array<i64: 1, 128>}, {pipeline_mode = #tpu.pipeline_mode<synchronous>, transform_indices = @transform_6, window_bounds = array<i64: 128, 128>}, {transform_indices = @transform_7, window_bounds = array<i64: 56, 128>}, {transform_indices = @transform_8, window_bounds = array<i64: 56, 256>}, {transform_indices = @transform_9, window_bounds = array<i64: 56, 128>}]} {
    %c0 = arith.constant 0 : index
    %c0_0 = arith.constant 0 : index
    %0 = vector.load %arg7[%c0, %c0_0] : memref<128x128xf32, #tpu.memory_space<vmem>>, vector<128x128xf32>
    %c0_1 = arith.constant 0 : index
    %c0_2 = arith.constant 0 : index
    %1 = vector.load %arg8[%c0_1, %c0_2] : memref<56x128xf32, #tpu.memory_space<vmem>>, vector<56x128xf32>
    %c0_3 = arith.constant 0 : index
    %c0_4 = arith.constant 0 : index
    %2 = vector.load %arg1[%c0_3, %c0_4] : memref<1x128xf32, #tpu.memory_space<vmem>>, vector<1x128xf32>
    %c0_5 = arith.constant 0 : index
    %c0_6 = arith.constant 0 : index
    %3 = vector.load %arg2[%c0_5, %c0_6] : memref<1x128xf32, #tpu.memory_space<vmem>>, vector<1x128xf32>
    %cst = arith.constant dense<0.000000e+00> : vector<56x128xf32>
    %4 = tpu.matmul %1, %0, %cst {dimension_numbers = #tpu.dot_dimension_numbers<[1], [0], [0], [1], [0, 0, 1, 1], [], []>} : vector<56x128xf32>, vector<128x128xf32>, vector<56x128xf32> -> vector<56x128xf32>
    %cst_7 = arith.constant 3.125000e-02 : f32
    %5 = vector.broadcast %cst_7 : f32 to vector<56x128xf32>
    %6 = arith.mulf %4, %5 : vector<56x128xf32>
    %7 = arith.subf %1, %6 : vector<56x128xf32>
    %8 = arith.mulf %7, %7 : vector<56x128xf32>
    %cst_8 = arith.constant dense<0.000000e+00> : vector<56x128xf32>
    %9 = tpu.matmul %8, %0, %cst_8 {dimension_numbers = #tpu.dot_dimension_numbers<[1], [0], [0], [1], [0, 0, 1, 1], [], []>} : vector<56x128xf32>, vector<128x128xf32>, vector<56x128xf32> -> vector<56x128xf32>
    %cst_9 = arith.constant 3.125000e-02 : f32
    %10 = vector.broadcast %cst_9 : f32 to vector<56x128xf32>
    %11 = arith.mulf %9, %10 : vector<56x128xf32>
    %cst_10 = arith.constant 9.99999974E-6 : f32
    %12 = vector.broadcast %cst_10 : f32 to vector<56x128xf32>
    %13 = arith.addf %11, %12 : vector<56x128xf32>
    %14 = math.rsqrt %13 : vector<56x128xf32>
    %15 = arith.mulf %7, %14 : vector<56x128xf32>
    %16 = vector.broadcast %2 : vector<1x128xf32> to vector<56x128xf32>
    %17 = arith.mulf %15, %16 : vector<56x128xf32>
    %18 = vector.broadcast %3 : vector<1x128xf32> to vector<56x128xf32>
    %19 = arith.addf %17, %18 : vector<56x128xf32>
    %c0_11 = arith.constant 0 : index
    %c0_12 = arith.constant 0 : index
    %20 = vector.load %arg9[%c0_11, %c0_12] : memref<56x256xf32, #tpu.memory_space<vmem>>, vector<56x256xf32>
    %21 = arith.negf %20 : vector<56x256xf32>
    %22 = math.exp %21 : vector<56x256xf32>
    %cst_13 = arith.constant 1.000000e+00 : f32
    %23 = vector.broadcast %cst_13 : f32 to vector<56x256xf32>
    %24 = arith.addf %23, %22 : vector<56x256xf32>
    %25 = arith.divf %23, %24 : vector<56x256xf32>
    %26 = arith.mulf %20, %25 : vector<56x256xf32>
    %27 = arith.truncf %26 : vector<56x256xf32> to vector<56x256xbf16>
    %c0_14 = arith.constant 0 : index
    %c0_15 = arith.constant 0 : index
    %28 = vector.load %arg3[%c0_14, %c0_15] : memref<256x128xbf16, #tpu.memory_space<vmem>>, vector<256x128xbf16>
    %cst_16 = arith.constant dense<0.000000e+00> : vector<56x128xf32>
    %29 = tpu.matmul %27, %28, %cst_16 {dimension_numbers = #tpu.dot_dimension_numbers<[1], [0], [0], [1], [0, 0, 1, 1], [], []>} : vector<56x256xbf16>, vector<256x128xbf16>, vector<56x128xf32> -> vector<56x128xf32>
    %c0_17 = arith.constant 0 : index
    %c0_18 = arith.constant 0 : index
    %30 = vector.load %arg5[%c0_17, %c0_18] : memref<1x128xf32, #tpu.memory_space<vmem>>, vector<1x128xf32>
    %31 = vector.broadcast %30 : vector<1x128xf32> to vector<56x128xf32>
    %32 = arith.addf %29, %31 : vector<56x128xf32>
    %c0_19 = arith.constant 0 : index
    %c0_20 = arith.constant 0 : index
    %33 = vector.load %arg4[%c0_19, %c0_20] : memref<256x128xbf16, #tpu.memory_space<vmem>>, vector<256x128xbf16>
    %cst_21 = arith.constant dense<0.000000e+00> : vector<56x128xf32>
    %34 = tpu.matmul %27, %33, %cst_21 {dimension_numbers = #tpu.dot_dimension_numbers<[1], [0], [0], [1], [0, 0, 1, 1], [], []>} : vector<56x256xbf16>, vector<256x128xbf16>, vector<56x128xf32> -> vector<56x128xf32>
    %c0_22 = arith.constant 0 : index
    %c0_23 = arith.constant 0 : index
    %35 = vector.load %arg6[%c0_22, %c0_23] : memref<1x128xf32, #tpu.memory_space<vmem>>, vector<1x128xf32>
    %36 = vector.broadcast %35 : vector<1x128xf32> to vector<56x128xf32>
    %37 = arith.addf %34, %36 : vector<56x128xf32>
    %cst_24 = arith.constant 1.000000e+00 : f32
    %38 = vector.broadcast %cst_24 : f32 to vector<56x128xf32>
    %39 = arith.addf %38, %37 : vector<56x128xf32>
    %40 = arith.mulf %19, %39 : vector<56x128xf32>
    %41 = arith.addf %40, %32 : vector<56x128xf32>
    %c0_25 = arith.constant 0 : index
    %c0_26 = arith.constant 0 : index
    %42 = vector.load %arg10[%c0_25, %c0_26] : memref<56x128xf32, #tpu.memory_space<vmem>>, vector<56x128xf32>
    tpu.vector_store %arg10[%c0_25, %c0_26], %41 {strides = array<i32>} : memref<56x128xf32, #tpu.memory_space<vmem>>, vector<56x128xf32>,
    return
  }
  func.func @transform_0(%arg0: i32) -> (i32, i32) {
    %c0_i32 = arith.constant 0 : i32
    %c0_i32_0 = arith.constant 0 : i32
    %c0_i32_1 = arith.constant 0 : i32
    return %c0_i32, %c0_i32_0 : i32, i32
  }
  func.func @transform_1(%arg0: i32) -> (i32, i32) {
    %c0_i32 = arith.constant 0 : i32
    %c0_i32_0 = arith.constant 0 : i32
    %c0_i32_1 = arith.constant 0 : i32
    return %c0_i32, %c0_i32_0 : i32, i32
  }
  func.func @transform_2(%arg0: i32) -> (i32, i32) {
    %c0_i32 = arith.constant 0 : i32
    %c0_i32_0 = arith.constant 0 : i32
    %c0_i32_1 = arith.constant 0 : i32
    return %c0_i32, %c0_i32_0 : i32, i32
  }
  func.func @transform_3(%arg0: i32) -> (i32, i32) {
    %c0_i32 = arith.constant 0 : i32
    %c0_i32_0 = arith.constant 0 : i32
    %c0_i32_1 = arith.constant 0 : i32
    return %c0_i32, %c0_i32_0 : i32, i32
  }
  func.func @transform_4(%arg0: i32) -> (i32, i32) {
    %c0_i32 = arith.constant 0 : i32
    %c0_i32_0 = arith.constant 0 : i32
    %c0_i32_1 = arith.constant 0 : i32
    return %c0_i32, %c0_i32_0 : i32, i32
  }
  func.func @transform_5(%arg0: i32) -> (i32, i32) {
    %c0_i32 = arith.constant 0 : i32
    %c0_i32_0 = arith.constant 0 : i32
    %c0_i32_1 = arith.constant 0 : i32
    return %c0_i32, %c0_i32_0 : i32, i32
  }
  func.func @transform_6(%arg0: i32) -> (i32, i32) {
    %c0_i32 = arith.constant 0 : i32
    %c0_i32_0 = arith.constant 0 : i32
    %c0_i32_1 = arith.constant 0 : i32
    return %c0_i32, %c0_i32_0 : i32, i32
  }
  func.func @transform_7(%arg0: i32) -> (i32, i32) {
    %c0_i32 = arith.constant 0 : i32
    %c0_i32_0 = arith.constant 0 : i32
    return %arg0, %c0_i32 : i32, i32
  }
  func.func @transform_8(%arg0: i32) -> (i32, i32) {
    %c0_i32 = arith.constant 0 : i32
    %c0_i32_0 = arith.constant 0 : i32
    return %arg0, %c0_i32 : i32, i32
  }
  func.func @transform_9(%arg0: i32) -> (i32, i32) {
    %c0_i32 = arith.constant 0 : i32
    %c0_i32_0 = arith.constant 0 : i32
    return %arg0, %c0_i32 : i32, i32
  }
}

</mosaic_0001>

<bundles_post_ra>
// kernel: tpu_custom_call.1
= control target key start
LH: loop header
LB: loop body
LE: loop exit
PB: predicated region body
PF: predicated region fallthrough
CT: control target
= control target key end

     0   :  { %14 = vsyncpa [#allocation3], 0  ;;  %s2016_s0 = inlined_call_operand.hbm [shape: f32[1,128], index: 0, kind: input, shape index: {}]   ;;  %s2017_s1 = inlined_call_operand.vmem [shape: f32[1,128], index: 1, kind: input, shape index: {}]   ;;  %s2018_s2 = inlined_call_operand.hbm [shape: bf16[256,128], index: 2, kind: input, shape index: {}]   ;;  %s2019_s3 = inlined_call_operand.hbm [shape: bf16[256,128], index: 3, kind: input, shape index: {}]   ;;  %s2020_s4 = inlined_call_operand.vmem [shape: f32[1,128], index: 4, kind: input, shape index: {}]   ;;  %s2021_s5 = inlined_call_operand.vmem [shape: f32[1,128], index: 5, kind: input, shape index: {}]   ;;  %s2022_s6 = inlined_call_operand.hbm [shape: f32[128,128], index: 6, kind: input, shape index: {}]   ;;  %s2023_s7 = inlined_call_operand.hbm [shape: f32[51,128], index: 7, kind: input, shape index: {}]   ;;  %s2024_s8 = inlined_call_operand.hbm [shape: f32[51,256], index: 8, kind: input, shape index: {}]   ;;  %s2025_s9 = inlined_call_operand.hbm [shape: f32[51,128], index: 9, kind: output, shape index: {}]  }
   0x1   :  { %15 = vsyncpa [#allocation6], 0 }
   0x2   :  { %16 = vsyncpa [#allocation9], 0 }
   0x3   :  { %17 = vsyncpa [#allocation12], 0 }
   0x4   :  { %18 = vsyncpa [#allocation4], 0  ;;  %s1592_s30 = smov [#allocation5]   ;;  %s1428_s13 = scalar_lea.hbm %s2018_s2, 2048 }
   0x5   :  { %s36_s10 = sshll.u32 %s1592_s30, 4  ;;  %p1429_p0 = scmp.ne.s32.totalorder %s2018_s2, %s1428_s13  ;;  %s37_s10 = int_to_ptr.vmem [resolvable:$true] %s36_s10 }
   0x6   :  { %p1432_p1 = scmp.lt.u32.totalorder %s1428_s13, %s2018_s2 }
   0x8   :  { %p1434_p2 = pnand %p1432_p1, %p1429_p0 }
   0xa   :  { %1437 = shalt.err (!%p1434_p2)
}
   0xb   :  { %s1438_s18 = scalar_lea.vmem %s37_s10, 2048  ;;  %p1443_p4 = scmp.lt.s32.totalorder %s37_s10, %s37_s10 }
   0xc   :  { %p1439_p3 = scmp.ne.s32.totalorder %s37_s10, %s1438_s18  ;;  %p1444_p5 = scmp.lt.s32.totalorder %s1438_s18, %s1438_s18 }
   0xe   :  { %p1445_p6 = por %p1444_p5, %p1443_p4 }
  0x10   :  { %p1446_p7 = pnand %p1445_p6, %p1439_p3 }
  0x12   :  { %1449 = shalt.err (!%p1446_p7)
}
  0x13   :  { %s1593_s19 = smov 64   ;;  %s1594_s20 = smov 4  }
  0x14   :  { %42 = dma.hbm_to_vmem [thread:$0]  %s2018_s2, 2048, %s37_s10, [#allocation6], %s1593_s19, %s1593_s19, %s1594_s20  }
  0x15   :  { %s1595_s23 = smov [#allocation8]   ;;  %s1450_s27 = scalar_lea.hbm %s2022_s6, 2048 }
  0x16   :  { %s64_s24 = sshll.u32 %s1595_s23, 4  ;;  %p1451_p8 = scmp.ne.s32.totalorder %s2022_s6, %s1450_s27  ;;  %s65_s24 = int_to_ptr.vmem [resolvable:$true] %s64_s24 }
  0x17   :  { %p1454_p9 = scmp.lt.u32.totalorder %s1450_s27, %s2022_s6 }
  0x19   :  { %p1456_p10 = pnand %p1454_p9, %p1451_p8 }
  0x1b   :  { %1459 = shalt.err (!%p1456_p10)
}
  0x1c   :  { %s1460_s12 = scalar_lea.vmem %s65_s24, 2048  ;;  %p1465_p12 = scmp.lt.s32.totalorder %s65_s24, %s65_s24 }
  0x1d   :  { %p1461_p11 = scmp.ne.s32.totalorder %s65_s24, %s1460_s12  ;;  %p1466_p13 = scmp.lt.s32.totalorder %s1460_s12, %s1460_s12 }
  0x1f   :  { %p1467_p0 = por %p1466_p13, %p1465_p12 }
  0x21   :  { %p1468_p1 = pnand %p1467_p0, %p1461_p11 }
  0x23   :  { %1471 = shalt.err (!%p1468_p1)
}
  0x24   :  { %s1596_s2 = smov 128   ;;  %s1597_s10 = smov 8  }
  0x25   :  { %70 = dma.hbm_to_vmem [thread:$0]  %s2022_s6, 2048, %s65_s24, [#allocation9], %s1596_s2, %s1596_s2, %s1597_s10  }
  0x26   :  { %s1598_s15 = smov [#allocation2]   ;;  %s1599_s17 = smov [#allocation7]  }
  0x27   :  { %s25_s16 = sshll.u32 %s1598_s15, 4  ;;  %s48_s18 = sshll.u32 %s1599_s17, 4  ;;  %s26_s16 = int_to_ptr.vmem [resolvable:$true] %s25_s16  ;;  %s1688_s18 = int_to_ptr.vmem [resolvable:$true] %s48_s18 }
  0x28   :  { %s1472_s23 = scalar_lea.hbm %s2016_s0, 16 }
  0x29   :  { %p1473_p2 = scmp.ne.s32.totalorder %s2016_s0, %s1472_s23  ;;  %p1476_p3 = scmp.lt.u32.totalorder %s1472_s23, %s2016_s0 }
  0x2b   :  { %p1478_p4 = pnand %p1476_p3, %p1473_p2 }
  0x2d   :  { %1481 = shalt.err (!%p1478_p4)
}
  0x2e   :  { %s1482_s6 = scalar_lea.vmem %s26_s16, 16  ;;  %s1486_s24 = scalar_lea.vmem %s26_s16, 32 }
  0x2f   :  { %p1483_p5 = scmp.ne.s32.totalorder %s26_s16, %s1482_s6  ;;  %p1487_p6 = scmp.lt.s32.totalorder %s26_s16, %s26_s16 }
  0x30   :  { %p1488_p7 = scmp.lt.s32.totalorder %s1486_s24, %s1482_s6 }
  0x32   :  { %p1489_p8 = por %p1488_p7, %p1487_p6 }
  0x34   :  { %p1490_p9 = pnand %p1489_p8, %p1483_p5 }
  0x36   :  { %1493 = shalt.err (!%p1490_p9)
}
  0x37   :  { %28 = dma.hbm_to_vmem [thread:$0]  %s2016_s0, 16, %s26_s16, [#allocation3]  }
  0x38   :  { %s1494_s13 = scalar_lea.hbm %s2019_s3, 2048 }
  0x39   :  { %p1495_p10 = scmp.ne.s32.totalorder %s2019_s3, %s1494_s13  ;;  %p1498_p11 = scmp.lt.u32.totalorder %s1494_s13, %s2019_s3 }
  0x3b   :  { %p1500_p12 = pnand %p1498_p11, %p1495_p10 }
  0x3d   :  { %1503 = shalt.err (!%p1500_p12)
}
  0x3e   :  { %s1504_s22 = scalar_lea.vmem %s1688_s18, 2048  ;;  %p1509_p0 = scmp.lt.s32.totalorder %s1688_s18, %s1688_s18 }
  0x3f   :  { %p1505_p13 = scmp.ne.s32.totalorder %s1688_s18, %s1504_s22  ;;  %p1510_p1 = scmp.lt.s32.totalorder %s1504_s22, %s1504_s22 }
  0x41   :  { %p1511_p2 = por %p1510_p1, %p1509_p0 }
  0x43   :  { %p1512_p3 = pnand %p1511_p2, %p1505_p13 }
  0x45   :  { %1515 = shalt.err (!%p1512_p3)
}
  0x46   :  { %54 = dma.hbm_to_vmem [thread:$0]  %s2019_s3, 2048, %s1688_s18, [#allocation6], %s1593_s19, %s1593_s19, %s1594_s20  }
  0x47   :  { %s1600_s23 = smov [#allocation10]   ;;  %s1601_s26 = smov [#allocation11]  }
  0x48   :  { %s76_s25 = sshll.u32 %s1600_s23, 4  ;;  %s88_s27 = sshll.u32 %s1601_s26, 4  ;;  %s77_s25 = int_to_ptr.vmem [resolvable:$true] %s76_s25  ;;  %s1722_s27 = int_to_ptr.vmem [resolvable:$true] %s88_s27 }
  0x49   :  { %s1516_s24 = scalar_lea.hbm %s2023_s7, 896 }
  0x4a   :  { %p1517_p4 = scmp.ne.s32.totalorder %s2023_s7, %s1516_s24  ;;  %p1520_p5 = scmp.lt.u32.totalorder %s1516_s24, %s2023_s7 }
  0x4c   :  { %p1522_p6 = pnand %p1520_p5, %p1517_p4 }
  0x4e   :  { %1525 = shalt.err (!%p1522_p6)
}
  0x4f   :  { %s1526_s3 = scalar_lea.vmem %s77_s25, 896  ;;  %p1531_p8 = scmp.lt.s32.totalorder %s77_s25, %s77_s25 }
  0x50   :  { %p1527_p7 = scmp.ne.s32.totalorder %s77_s25, %s1526_s3  ;;  %p1532_p9 = scmp.lt.s32.totalorder %s1526_s3, %s1526_s3 }
  0x52   :  { %p1533_p10 = por %p1532_p9, %p1531_p8 }
  0x54   :  { %p1534_p11 = pnand %p1533_p10, %p1527_p7 }
  0x56   :  { %1537 = shalt.err (!%p1534_p11)
}
  0x57   :  { %82 = dma.hbm_to_vmem [thread:$0]  %s2023_s7, 896, %s77_s25, [#allocation9], %s1596_s2, %s1596_s2, %s1597_s10  }
  0x58   :  { %s1538_s14 = scalar_lea.hbm %s2024_s8, 1792 }
  0x59   :  { %p1539_p12 = scmp.ne.s32.totalorder %s2024_s8, %s1538_s14  ;;  %p1542_p13 = scmp.lt.u32.totalorder %s1538_s14, %s2024_s8 }
  0x5b   :  { %p1544_p0 = pnand %p1542_p13, %p1539_p12 }
  0x5d   :  { %1547 = shalt.err (!%p1544_p0)
}
  0x5e   :  { %s1548_s0 = scalar_lea.vmem %s1722_s27, 1792  ;;  %p1553_p2 = scmp.lt.s32.totalorder %s1722_s27, %s1722_s27 }
  0x5f   :  { %p1549_p1 = scmp.ne.s32.totalorder %s1722_s27, %s1548_s0  ;;  %p1554_p3 = scmp.lt.s32.totalorder %s1548_s0, %s1548_s0 }
  0x61   :  { %p1555_p4 = por %p1554_p3, %p1553_p2 }
  0x63   :  { %p1556_p5 = pnand %p1555_p4, %p1549_p1 }
  0x65   :  { %1559 = shalt.err (!%p1556_p5)
}
  0x66   :  { %s1602_s7 = smov 256   ;;  %s1603_s16 = smov 16  }
  0x67   :  { %94 = dma.hbm_to_vmem [thread:$0]  %s2024_s8, 1792, %s1722_s27, [#allocation12], %s1602_s7, %s1602_s7, %s1603_s16  }
  0x68   :  { %1582 = dma.done.wait [#allocation3], 16  }
  0x69   :  { %1583 = vsyncadd [#allocation3], 4294967280 }
  0x6a   :  { %1584 = dma.done.wait [#allocation6], 4096  }
  0x6b   :  { %1585 = vsyncadd [#allocation6], 4294963200 }
  0x6c   :  { %1586 = dma.done.wait [#allocation9], 2944  }
  0x6d   :  { %1587 = vsyncadd [#allocation9], 4294964352 }
  0x6e   :  { %1588 = dma.done.wait [#allocation12], 1792  }
  0x6f   :  { %1589 = vsyncadd [#allocation12], 4294965504  ;;  %v1604_v0 = vmov 0.0|0.0   ;;  %vm1605_vm0 = vmmov 0   ;;  %v1606_v1 = vmov 0.0   ;;  %v114_v2 = vld [vmem:[#allocation8] sm:$0xff] }
  0x70   :  { %1262 = vmatprep.subr.bf16.mxu0 %v1604_v0  ;;  %1188 = vmatprep.mubr.msk.f32.mxu0 %vm1605_vm0, %v1606_v1  ;;  %v115_v3 = vld [vmem:[#allocation8 + $0x8] sm:$0xff]  ;;  %v116_v4 = vld [vmem:[#allocation8 + $0x10] sm:$0xff]  ;;  %v117_v6 = vld [vmem:[#allocation8 + $0x18] sm:$0xff] }
  0x71   :  { %1286 = vmatprep.subr.bf16.mxu1 %v1604_v0  ;;  %1241 = vmatprep.mubr.msk.f32.mxu1 %vm1605_vm0, %v1606_v1  ;;  %v1263_v5 = vpack.c.bf16 %v115_v3, %v114_v2  ;;  %v1266_v7 = vpack.c.bf16 %v117_v6, %v116_v4  ;;  %v118_v8 = vld [vmem:[#allocation8 + $0x20] sm:$0xff]  ;;  %v119_v9 = vld [vmem:[#allocation8 + $0x28] sm:$0xff]  ;;  %v120_v11 = vld [vmem:[#allocation8 + $0x30] sm:$0xff] }
  0x72   :  { %v1269_v10 = vpack.c.bf16 %v119_v9, %v118_v8  ;;  %v121_v12 = vld [vmem:[#allocation8 + $0x38] sm:$0xff]  ;;  %v122_v13 = vld [vmem:[#allocation8 + $0x40] sm:$0xff]  ;;  %v123_v14 = vld [vmem:[#allocation8 + $0x48] sm:$0xff] }
  0x73   :  { %1264 = vmatpush3.bf16.msra.mxu0 %v1263_v5  ;;  %1288 = vmatpush3.bf16.msra.mxu1 %v1263_v5  ;;  %v1272_v15 = vpack.c.bf16 %v121_v12, %v120_v11  ;;  %v124_v16 = vld [vmem:[#allocation8 + $0x50] sm:$0xff]  ;;  %v125_v17 = vld [vmem:[#allocation8 + $0x58] sm:$0xff]  ;;  %v1275_v18 = vpack.c.bf16 %v123_v14, %v122_v13  ;;  %v126_v19 = vld [vmem:[#allocation8 + $0x60] sm:$0xff] }
  0x74   :  { %1265 = vmatprep.subr.bf16.mxu0 %v1604_v0  ;;  %1289 = vmatprep.subr.bf16.mxu1 %v1604_v0  ;;  %v127_v20 = vld [vmem:[#allocation8 + $0x68] sm:$0xff]  ;;  %v1278_v21 = vpack.c.bf16 %v125_v17, %v124_v16  ;;  %v128_v22 = vld [vmem:[#allocation8 + $0x70] sm:$0xff]  ;;  %v129_v23 = vld [vmem:[#allocation8 + $0x78] sm:$0xff] }
  0x75   :  { %v1281_v24 = vpack.c.bf16 %v127_v20, %v126_v19  ;;  %v1284_v25 = vpack.c.bf16 %v129_v23, %v128_v22  ;;  %v1760_v26 = vld [vmem:[#allocation10] sm:$0xff]  ;;  %v1765_v27 = vld [vmem:[#allocation10 + $0x8] sm:$0xff]  ;;  %v1770_v28 = vld [vmem:[#allocation10 + $0x10] sm:$0xff] }
  0x76   :  { %v1775_v29 = vld [vmem:[#allocation10 + $0x18] sm:$0xff]  ;;  %v1780_v30 = vld [vmem:[#allocation10 + $0x20] sm:$0xff]  ;;  %v1785_v31 = vld [vmem:[#allocation10 + $0x28] sm:$0xff] }
  0x77   :  { %1267 = vmatpush3.bf16.msra.mxu0 %v1266_v7  ;;  %1291 = vmatpush3.bf16.msra.mxu1 %v1266_v7  ;;  %v1790_v32 = vld [vmem:[#allocation10 + $0x30] sm:$0xff]  ;;  %v1326_v33 = vld [vmem:[#allocation7 + $0x40] sm:$0xff]   ;;  %v1799_v40 = vld [vmem:[#allocation11] sm:$0xff] }
  0x78   :  { %1268 = vmatprep.subr.bf16.mxu0 %v1604_v0  ;;  %1292 = vmatprep.subr.bf16.mxu1 %v1604_v0  ;;  %v1327_v34 = vld [vmem:[#allocation5 + $0x40] sm:$0xff]   ;;  %v1795_v37 = vld [vmem:[#allocation11 + $0x18] sm:$0xff]  ;;  %v1801_v41 = vld [vmem:[#allocation11 + $0x10] sm:$0xff]  ;;  %v982_v42 = vmul.f32 -1.442695, %v1799_v40 }
  0x79   :  { %v1329_v35 = vld [vmem:[#allocation5] sm:$0xff]   ;;  %v985_v39 = vmul.f32 -1.442695, %v1795_v37  ;;  %v984_v43 = vmul.f32 -1.442695, %v1801_v41  ;;  %v1331_v44 = vld [vmem:[#allocation5 + $0x48] sm:$0xff]  }
  0x7a   :  { %v1793_v36 = vld [vmem:[#allocation11 + $0x8] sm:$0xff]  ;;  %v1333_v45 = vld [vmem:[#allocation5 + $0x8] sm:$0xff]   ;;  %v1335_v46 = vld [vmem:[#allocation5 + $0x50] sm:$0xff]  }
  0x7b   :  { %1270 = vmatpush3.bf16.msra.mxu0 %v1269_v10  ;;  %1294 = vmatpush3.bf16.msra.mxu1 %v1269_v10  ;;  %v983_v38 = vmul.f32 -1.442695, %v1793_v36  ;;  %v1337_v47 = vld [vmem:[#allocation5 + $0x10] sm:$0xff]   ;;  %v1805_v48 = vld [vmem:[#allocation11 + $0x28] sm:$0xff]  ;;  %v1811_v52 = vld [vmem:[#allocation11 + $0x20] sm:$0xff] }
  0x7c   :  { %1271 = vmatprep.subr.bf16.mxu0 %v1604_v0  ;;  %1295 = vmatprep.subr.bf16.mxu1 %v1604_v0  ;;  %v1807_v49 = vld [vmem:[#allocation11 + $0x38] sm:$0xff]  ;;  %v987_v50 = vmul.f32 -1.442695, %v1805_v48  ;;  %v1813_v53 = vld [vmem:[#allocation11 + $0x30] sm:$0xff]  ;;  %v986_v54 = vmul.f32 -1.442695, %v1811_v52 }
  0x7d   :  { %1358 = vpow2.f32 %v983_v38  ;;  %v989_v51 = vmul.f32 -1.442695, %v1807_v49  ;;  %v988_v55 = vmul.f32 -1.442695, %v1813_v53  ;;  %v1339_v56 = vld [vmem:[#allocation5 + $0x58] sm:$0xff]   ;;  %v1343_v62 = vld [vmem:[#allocation5 + $0x60] sm:$0xff]  }
  0x7e   :  { %1360 = vpow2.f32 %v985_v39  ;;  %v1341_v57 = vld [vmem:[#allocation5 + $0x18] sm:$0xff]   ;;  %v1345_v2 = vld [vmem:[#allocation5 + $0x20] sm:$0xff]   ;;  %v1819_v5 = vld [vmem:[#allocation11 + $0x58] sm:$0xff] }
  0x7f   :  { %1273 = vmatpush3.bf16.msra.mxu0 %v1272_v15  ;;  %1297 = vmatpush3.bf16.msra.mxu1 %v1272_v15  ;;  %1362 = vpow2.f32 %v982_v42  ;;  %v1817_v4 = vld [vmem:[#allocation11 + $0x48] sm:$0xff]  ;;  %v993_v8 = vmul.f32 -1.442695, %v1819_v5  ;;  %v1823_v9 = vld [vmem:[#allocation11 + $0x40] sm:$0xff]  ;;  %v1825_v10 = vld [vmem:[#allocation11 + $0x50] sm:$0xff] }
  0x80   :  { %1274 = vmatprep.subr.bf16.mxu0 %v1604_v0  ;;  %1298 = vmatprep.subr.bf16.mxu1 %v1604_v0  ;;  %1364 = vpow2.f32 %v984_v43  ;;  %v991_v7 = vmul.f32 -1.442695, %v1817_v4  ;;  %v990_v11 = vmul.f32 -1.442695, %v1823_v9  ;;  %v1347_v12 = vld [vmem:[#allocation5 + $0x68] sm:$0xff]   ;;  %v1351_v19 = vld [vmem:[#allocation5 + $0x70] sm:$0xff]  }
  0x81   :  { %1366 = vpow2.f32 %v987_v50  ;;  %v992_v13 = vmul.f32 -1.442695, %v1825_v10  ;;  %v1349_v14 = vld [vmem:[#allocation5 + $0x28] sm:$0xff]   ;;  %v1353_v22 = vld [vmem:[#allocation5 + $0x30] sm:$0xff]   ;;  %v1355_v38 = vld [vmem:[#allocation5 + $0x78] sm:$0xff]  }
  0x82   :  { %1368 = vpow2.f32 %v989_v51 }
  0x83   :  { %1276 = vmatpush3.bf16.msra.mxu0 %v1275_v18  ;;  %1300 = vmatpush3.bf16.msra.mxu1 %v1275_v18  ;;  %1370 = vpow2.f32 %v986_v54 }
  0x84   :  { %1277 = vmatprep.subr.bf16.mxu0 %v1604_v0  ;;  %1301 = vmatprep.subr.bf16.mxu1 %v1604_v0  ;;  %1372 = vpow2.f32 %v988_v55 }
  0x87   :  { %1279 = vmatpush3.bf16.msra.mxu0 %v1278_v21  ;;  %1303 = vmatpush3.bf16.msra.mxu1 %v1278_v21  ;;  %v1359_v58 = vpop.eup %1358 }
  0x88   :  { %1280 = vmatprep.subr.bf16.mxu0 %v1604_v0  ;;  %1304 = vmatprep.subr.bf16.mxu1 %v1604_v0  ;;  %v1361_v59 = vpop.eup %1360  ;;  %v471_v60 = vadd.f32 1.0, %v1359_v58 }
  0x89   :  { %v1363_v61 = vpop.eup %1362  ;;  %v473_v63 = vadd.f32 1.0, %v1361_v59 }
  0x8a   :  { %1374 = vrcp.f32 %v471_v60  ;;  %v470_v3 = vadd.f32 1.0, %v1363_v61 }
  0x8b   :  { %1282 = vmatpush3.bf16.msra.mxu0 %v1281_v24  ;;  %1306 = vmatpush3.bf16.msra.mxu1 %v1281_v24  ;;  %1376 = vrcp.f32 %v473_v63  ;;  %v1829_v24 = vld [vmem:[#allocation11 + $0x68] sm:$0xff] }
  0x8c   :  { %1283 = vmatprep.subr.bf16.mxu0 %v1604_v0  ;;  %1307 = vmatprep.subr.bf16.mxu1 %v1604_v0  ;;  %v1365_v0 = vpop.eup %1364  ;;  %1378 = vrcp.f32 %v470_v3 }
  0x8d   :  { %v472_v6 = vadd.f32 1.0, %v1365_v0  ;;  %v1367_v15 = vpop.eup %1366 }
  0x8e   :  { %v1369_v16 = vpop.eup %1368  ;;  %v475_v17 = vadd.f32 1.0, %v1367_v15 }
  0x8f   :  { %1285 = vmatpush3.bf16.msra.mxu0 %v1284_v25  ;;  %1309 = vmatpush3.bf16.msra.mxu1 %v1284_v25  ;;  %1380 = vrcp.f32 %v472_v6  ;;  %v1371_v18 = vpop.eup %1370  ;;  %v477_v20 = vadd.f32 1.0, %v1369_v16 }
  0x90   :  { %1116 = vmatprep.subr.bf16.mxu1 %v1326_v33  ;;  %1076 = vmatprep.subr.bf16.mxu0 %v1327_v34  ;;  %1382 = vpow2.f32 %v991_v7  ;;  %v1373_v21 = vpop.eup %1372  ;;  %v474_v23 = vadd.f32 1.0, %v1371_v18  ;;  %v995_v33 = vmul.f32 -1.442695, %v1829_v24  ;;  %v1832_v34 = vld [vmem:[#allocation11 + $0x60] sm:$0xff] }
  0x91   :  { %1384 = vpow2.f32 %v993_v8  ;;  %v476_v25 = vadd.f32 1.0, %v1373_v21  ;;  %v994_v39 = vmul.f32 -1.442695, %v1832_v34 }
  0x92   :  { %1189 = vmatmul.mubr.f32.vlgmr.msra.gmra.mrb[0].mxu0 %v1760_v26  ;;  %1386 = vpow2.f32 %v990_v11 }
  0x93   :  { %1191 = vmatprep.mubr.msk.f32.mxu0 %vm1605_vm0, %v1606_v1  ;;  %1077 = vmatpush3.bf16.msra.mxu0 %v1329_v35  ;;  %1388 = vpow2.f32 %v992_v13 }
  0x94   :  { %1078 = vmatprep.subr.bf16.mxu0 %v1331_v44  ;;  %1390 = vrcp.f32 %v475_v17  ;;  %v1375_v35 = vpop.eup %1374 }
  0x95   :  { %1392 = vrcp.f32 %v477_v20  ;;  %v1377_v42 = vpop.eup %1376  ;;  %v513_v43 = vmul.f32 %v1375_v35, %v1793_v36 }
  0x96   :  { %1192 = vmatmul.mubr.f32.gmra.mrb[2].mxu0 %v1765_v27  ;;  %1394 = vrcp.f32 %v474_v23  ;;  %v1379_v44 = vpop.eup %1378 }
  0x97   :  { %1194 = vmatprep.mubr.msk.f32.mxu0 %vm1605_vm0, %v1606_v1  ;;  %1079 = vmatpush3.bf16.msra.mxu0 %v1333_v45  ;;  %1396 = vrcp.f32 %v476_v25  ;;  %v1357_v45 = vld [vmem:[#allocation5 + $0x38] sm:$0xff]   ;;  %v512_v50 = vmul.f32 %v1379_v44, %v1799_v40 }
  0x98   :  { %1080 = vmatprep.subr.bf16.mxu0 %v1335_v46  ;;  %v515_v46 = vmul.f32 %v1377_v42, %v1795_v37  ;;  %1398 = vpow2.f32 %v995_v33 }
  0x99   :  { %1400 = vpow2.f32 %v994_v39  ;;  %v1328_v39 = vld [vmem:[#allocation7] sm:$0xff]  }
  0x9a   :  { %1195 = vmatmul.mubr.f32.gmra.mrb[4].mxu0 %v1770_v28  ;;  %v1838_v54 = vpack.c.bf16 %v515_v46, %v513_v43  ;;  %v1330_v43 = vld [vmem:[#allocation7 + $0x48] sm:$0xff]  }
  0x9b   :  { %1197 = vmatprep.mubr.msk.f32.mxu0 %vm1605_vm0, %v1606_v1  ;;  %1081 = vmatpush3.bf16.msra.mxu0 %v1337_v47  ;;  %v1381_v47 = vpop.eup %1380  ;;  %v1332_v46 = vld [vmem:[#allocation7 + $0x8] sm:$0xff]  }
  0x9c   :  { %1082 = vmatprep.subr.bf16.mxu0 %v1339_v56  ;;  %v1383_v51 = vpop.eup %1382  ;;  %v514_v55 = vmul.f32 %v1381_v47, %v1801_v41 }
  0x9d   :  { %v1385_v56 = vpop.eup %1384 }
  0x9e   :  { %1198 = vmatmul.mubr.f32.gmra.mrb[6].mxu0 %v1775_v29  ;;  %v1387_v36 = vpop.eup %1386  ;;  %v1842_v58 = vpack.c.bf16 %v514_v55, %v512_v50  ;;  %v481_v59 = vadd.f32 1.0, %v1385_v56  ;;  %v1336_v56 = vld [vmem:[#allocation7 + $0x10] sm:$0xff]  }
  0x9f   :  { %1200 = vmatprep.mubr.msk.f32.mxu0 %vm1605_vm0, %v1606_v1  ;;  %1083 = vmatpush3.bf16.msra.mxu0 %v1341_v57  ;;  %v479_v57 = vadd.f32 1.0, %v1383_v51  ;;  %v1389_v37 = vpop.eup %1388  ;;  %v478_v60 = vadd.f32 1.0, %v1387_v36  ;;  %v1334_v51 = vld [vmem:[#allocation7 + $0x50] sm:$0xff]  }
  0xa0   :  { %1084 = vmatprep.subr.bf16.mxu0 %v1343_v62  ;;  %v1391_v61 = vpop.eup %1390  ;;  %v480_v40 = vadd.f32 1.0, %v1389_v37  ;;  %v1338_v37 = vld [vmem:[#allocation7 + $0x58] sm:$0xff]  }
  0xa1   :  { %1402 = vrcp.f32 %v479_v57  ;;  %v1393_v62 = vpop.eup %1392  ;;  %v517_v63 = vmul.f32 %v1391_v61, %v1805_v48  ;;  %v1340_v61 = vld [vmem:[#allocation7 + $0x18] sm:$0xff]  }
  0xa2   :  { %1201 = vmatmul.mubr.f32.gmra.mrb[8].mxu0 %v1780_v30  ;;  %1404 = vrcp.f32 %v481_v59  ;;  %v1395_v41 = vpop.eup %1394  ;;  %v519_v0 = vmul.f32 %v1393_v62, %v1807_v49 }
  0xa3   :  { %1203 = vmatprep.mubr.msk.f32.mxu0 %vm1605_vm0, %v1606_v1  ;;  %1085 = vmatpush3.bf16.msra.mxu0 %v1345_v2  ;;  %1406 = vrcp.f32 %v478_v60  ;;  %v1397_v2 = vpop.eup %1396  ;;  %v516_v3 = vmul.f32 %v1395_v41, %v1811_v52  ;;  %v1342_v41 = vld [vmem:[#allocation7 + $0x60] sm:$0xff]  }
  0xa4   :  { %1086 = vmatprep.subr.bf16.mxu0 %v1347_v12  ;;  %1408 = vrcp.f32 %v480_v40  ;;  %v1399_v6 = vpop.eup %1398  ;;  %v1848_v7 = vpack.c.bf16 %v519_v0, %v517_v63  ;;  %v518_v8 = vmul.f32 %v1397_v2, %v1813_v53  ;;  %v1344_v2 = vld [vmem:[#allocation7 + $0x20] sm:$0xff]  }
  0xa5   :  { %v1401_v11 = vpop.eup %1400  ;;  %v483_v12 = vadd.f32 1.0, %v1399_v6 }
  0xa6   :  { %1204 = vmatmul.mubr.f32.gmra.mrb[10].mxu0 %v1785_v31  ;;  %v1852_v13 = vpack.c.bf16 %v518_v8, %v516_v3  ;;  %v482_v48 = vadd.f32 1.0, %v1401_v11  ;;  %v1346_v11 = vld [vmem:[#allocation7 + $0x68] sm:$0xff]  }
  0xa7   :  { %1206 = vmatprep.mubr.msk.f32.mxu0 %vm1605_vm0, %v1606_v1  ;;  %1087 = vmatpush3.bf16.msra.mxu0 %v1349_v14  ;;  %1410 = vrcp.f32 %v483_v12 }
  0xa8   :  { %1088 = vmatprep.subr.bf16.mxu0 %v1351_v19  ;;  %1412 = vrcp.f32 %v482_v48  ;;  %v1348_v48 = vld [vmem:[#allocation7 + $0x28] sm:$0xff]  }
  0xaa   :  { %1207 = vmatmul.mubr.f32.gmra.mrb[12].mxu0 %v1790_v32 }
  0xab   :  { %1089 = vmatpush3.bf16.msra.mxu0 %v1353_v22  ;;  %701 = vmatprep.mubr.bf16.mxu0 %v1838_v54  ;;  %v1403_v49 = vpop.eup %1402 }
  0xac   :  { %1090 = vmatprep.subr.bf16.mxu0 %v1355_v38  ;;  %v1405_v14 = vpop.eup %1404  ;;  %v521_v52 = vmul.f32 %v1403_v49, %v1817_v4 }
  0xad   :  { %v1407_v15 = vpop.eup %1406  ;;  %v523_v16 = vmul.f32 %v1405_v14, %v1819_v5 }
  0xae   :  { %v1409_v17 = vpop.eup %1408  ;;  %v520_v53 = vmul.f32 %v1407_v15, %v1823_v9  ;;  %v1350_v15 = vld [vmem:[#allocation7 + $0x70] sm:$0xff]  }
  0xaf   :  { %1091 = vmatpush3.bf16.msra.mxu0 %v1357_v45  ;;  %v1858_v18 = vpack.c.bf16 %v523_v16, %v521_v52  ;;  %v522_v19 = vmul.f32 %v1409_v17, %v1825_v10 }
  0xb1   :  { %v1862_v20 = vpack.c.bf16 %v522_v19, %v520_v53  ;;  %v1411_v21 = vpop.eup %1410  ;;  %v1354_v53 = vld [vmem:[#allocation7 + $0x78] sm:$0xff]  }
  0xb2   :  { %702 = vmatmul.mubr.bf16.vlgmr.msra.gmra.mrb[16].mxu0 %v1842_v58  ;;  %v1413_v22 = vpop.eup %1412  ;;  %v525_v4 = vmul.f32 %v1411_v21, %v1829_v24  ;;  %v1356_v19 = vld [vmem:[#allocation7 + $0x38] sm:$0xff]  }
  0xb3   :  { %709 = vmatprep.mubr.bf16.mxu0 %v1848_v7  ;;  %v524_v23 = vmul.f32 %v1413_v22, %v1832_v34 }
  0xb4   :  { %v1867_v5 = vpack.c.bf16 %v525_v4, %v525_v4 }
  0xb5   :  { %v1869_v25 = vpack.c.bf16 %v524_v23, %v524_v23 }
  0xba   :  { %710 = vmatmul.mubr.bf16.gmra.mrb[20].mxu0 %v1852_v13 }
  0xbb   :  { %717 = vmatprep.mubr.bf16.mxu0 %v1858_v18 }
  0xc2   :  { %718 = vmatmul.mubr.bf16.gmra.mrb[24].mxu0 %v1862_v20 }
  0xc3   :  { %725 = vmatprep.mubr.bf16.mxu0 %v1867_v5 }
  0xca   :  { %726 = vmatmul.mubr.bf16.gmra.mrb[28].mxu0 %v1869_v25 }
 0x165   :  { %v205_v9 = vpop.f32.mrb[0].mxu0 }
 0x166   :  { %v239_v10 = vmul.f32 0.03125, %v205_v9  ;;  %v1190_v33 = vpop.f32.mrb[1].mxu0 }
 0x168   :  { %v1874_v35 = vsub.f32 %v1760_v26, %v239_v10 }
 0x169   :  { %v210_v38 = vpop.f32.mrb[2].mxu0 }
 0x16a   :  { %v240_v42 = vmul.f32 0.03125, %v210_v38  ;;  %v1193_v24 = vpop.f32.mrb[3].mxu0  ;;  %v253_v34 = vmul.f32 %v1874_v35, %v1874_v35 }
 0x16c   :  { %v1879_v44 = vsub.f32 %v1765_v27, %v240_v42  ;;  %1242 = vmatmul.mubr.f32.vlgmr.msra.gmra.mrb[0].mxu1 %v253_v34 }
 0x16d   :  { %1117 = vmatpush3.bf16.msra.mxu1 %v1328_v39  ;;  %v215_v45 = vpop.f32.mrb[4].mxu0  ;;  %1244 = vmatprep.mubr.msk.f32.mxu1 %vm1605_vm0, %v1606_v1 }
 0x16e   :  { %v241_v26 = vmul.f32 0.03125, %v215_v45  ;;  %1118 = vmatprep.subr.bf16.mxu1 %v1330_v43  ;;  %v1196_v47 = vpop.f32.mrb[5].mxu0  ;;  %v254_v50 = vmul.f32 %v1879_v44, %v1879_v44 }
 0x170   :  { %v1886_v55 = vsub.f32 %v1770_v28, %v241_v26  ;;  %1245 = vmatmul.mubr.f32.gmra.mrb[2].mxu1 %v254_v50 }
 0x171   :  { %1119 = vmatpush3.bf16.msra.mxu1 %v1332_v46  ;;  %v220_v27 = vpop.f32.mrb[6].mxu0  ;;  %1247 = vmatprep.mubr.msk.f32.mxu1 %vm1605_vm0, %v1606_v1 }
 0x172   :  { %v242_v57 = vmul.f32 0.03125, %v220_v27  ;;  %1120 = vmatprep.subr.bf16.mxu1 %v1334_v51  ;;  %v1199_v36 = vpop.f32.mrb[7].mxu0  ;;  %v255_v59 = vmul.f32 %v1886_v55, %v1886_v55 }
 0x174   :  { %v1893_v60 = vsub.f32 %v1775_v29, %v242_v57  ;;  %1248 = vmatmul.mubr.f32.gmra.mrb[4].mxu1 %v255_v59 }
 0x175   :  { %1121 = vmatpush3.bf16.msra.mxu1 %v1336_v56  ;;  %v225_v28 = vpop.f32.mrb[8].mxu0  ;;  %1250 = vmatprep.mubr.msk.f32.mxu1 %vm1605_vm0, %v1606_v1 }
 0x176   :  { %v243_v40 = vmul.f32 0.03125, %v225_v28  ;;  %1122 = vmatprep.subr.bf16.mxu1 %v1338_v37  ;;  %v1202_v62 = vpop.f32.mrb[9].mxu0  ;;  %v256_v63 = vmul.f32 %v1893_v60, %v1893_v60 }
 0x178   :  { %v1900_v0 = vsub.f32 %v1780_v30, %v243_v40  ;;  %1251 = vmatmul.mubr.f32.gmra.mrb[6].mxu1 %v256_v63 }
 0x179   :  { %1123 = vmatpush3.bf16.msra.mxu1 %v1340_v61  ;;  %v230_v29 = vpop.f32.mrb[10].mxu0  ;;  %1253 = vmatprep.mubr.msk.f32.mxu1 %vm1605_vm0, %v1606_v1 }
 0x17a   :  { %v244_v3 = vmul.f32 0.03125, %v230_v29  ;;  %1124 = vmatprep.subr.bf16.mxu1 %v1342_v41  ;;  %v1205_v6 = vpop.f32.mrb[11].mxu0  ;;  %v257_v8 = vmul.f32 %v1900_v0, %v1900_v0 }
 0x17c   :  { %v1907_v12 = vsub.f32 %v1785_v31, %v244_v3  ;;  %1254 = vmatmul.mubr.f32.gmra.mrb[8].mxu1 %v257_v8  ;;  %v1352_v31 = vld [vmem:[#allocation7 + $0x30] sm:$0xff]  }
 0x17d   :  { %1125 = vmatpush3.bf16.msra.mxu1 %v1344_v2  ;;  %v235_v30 = vpop.f32.mrb[12].mxu0  ;;  %1256 = vmatprep.mubr.msk.f32.mxu1 %vm1605_vm0, %v1606_v1 }
 0x17e   :  { %v245_v49 = vmul.f32 0.03125, %v235_v30  ;;  %1126 = vmatprep.subr.bf16.mxu1 %v1346_v11  ;;  %v1208_v14 = vpop.f32.mrb[13].mxu0  ;;  %v258_v52 = vmul.f32 %v1907_v12, %v1907_v12 }
 0x180   :  { %v1914_v16 = vsub.f32 %v1790_v32, %v245_v49  ;;  %1257 = vmatmul.mubr.f32.gmra.mrb[10].mxu1 %v258_v52 }
 0x181   :  { %1127 = vmatpush3.bf16.msra.mxu1 %v1348_v48  ;;  %1259 = vmatprep.mubr.msk.f32.mxu1 %vm1605_vm0, %v1606_v1 }
 0x182   :  { %1128 = vmatprep.subr.bf16.mxu1 %v1350_v15  ;;  %v259_v17 = vmul.f32 %v1914_v16, %v1914_v16  ;;  %v1943_v15 = vld [vmem:[#allocation2] ss:$0 sm:$0xff] }
 0x184   :  { %1260 = vmatmul.mubr.f32.gmra.mrb[12].mxu1 %v259_v17 }
 0x185   :  { %1129 = vmatpush3.bf16.msra.mxu1 %v1352_v31  ;;  %900 = vmatprep.mubr.bf16.mxu1 %v1838_v54  ;;  %v1092_v1 = vpop.f32.mrb[16].mxu0 }
 0x186   :  { %1130 = vmatprep.subr.bf16.mxu1 %v1354_v53  ;;  %v1093_v32 = vpop.f32.mrb[17].mxu0 }
 0x187   :  { %v1095_v21 = vpop.f32.mrb[18].mxu0  ;;  %v1928_v54 = vadd.f32 %v1093_v32, %v1092_v1 }
 0x188   :  { %v1096_v22 = vpop.f32.mrb[19].mxu0 }
 0x189   :  { %1131 = vmatpush3.bf16.msra.mxu1 %v1356_v19  ;;  %v1930_v4 = vadd.f32 %v1096_v22, %v1095_v21  ;;  %v1949_v19 = vld [vmem:[%s2021_s5] ss:$0 sm:$0xff] }
 0x18c   :  { %901 = vmatmul.mubr.bf16.vlgmr.msra.gmra.mrb[16].mxu1 %v1842_v58 }
 0x18d   :  { %908 = vmatprep.mubr.bf16.mxu1 %v1848_v7  ;;  %v1098_v58 = vpop.f32.mrb[20].mxu0 }
 0x18e   :  { %v1099_v7 = vpop.f32.mrb[21].mxu0 }
 0x18f   :  { %v1101_v23 = vpop.f32.mrb[22].mxu0 }
 0x194   :  { %909 = vmatmul.mubr.bf16.gmra.mrb[20].mxu1 %v1852_v13  ;;  %v1932_v13 = vadd.f32 %v1099_v7, %v1098_v58 }
 0x195   :  { %916 = vmatprep.mubr.bf16.mxu1 %v1858_v18  ;;  %v1102_v18 = vpop.f32.mrb[23].mxu0 }
 0x196   :  { %v1934_v9 = vadd.f32 %v1102_v18, %v1101_v23 }
 0x19c   :  { %917 = vmatmul.mubr.bf16.gmra.mrb[24].mxu1 %v1862_v20  ;;  %v1104_v20 = vpop.f32.mrb[24].mxu0 }
 0x19d   :  { %924 = vmatprep.mubr.bf16.mxu1 %v1867_v5  ;;  %v1105_v5 = vpop.f32.mrb[25].mxu0 }
 0x19e   :  { %v1936_v10 = vadd.f32 %v1105_v5, %v1104_v20 }
 0x1a4   :  { %925 = vmatmul.mubr.bf16.gmra.mrb[28].mxu1 %v1869_v25  ;;  %v1107_v25 = vpop.f32.mrb[26].mxu0 }
 0x1a5   :  { %v1108_v33 = vpop.f32.mrb[27].mxu0 }
 0x1a6   :  { %v1938_v38 = vadd.f32 %v1108_v33, %v1107_v25  ;;  %v1110_v39 = vpop.f32.mrb[28].mxu0 }
 0x1a7   :  { %v1111_v42 = vpop.f32.mrb[29].mxu0 }
 0x1a8   :  { %v1940_v24 = vadd.f32 %v1111_v42, %v1110_v39  ;;  %v1113_v34 = vpop.f32.mrb[30].mxu0 }
 0x1a9   :  { %v1114_v43 = vpop.f32.mrb[31].mxu0 }
 0x23f   :  { %v326_v45 = vpop.f32.mrb[0].mxu1 }
 0x240   :  { %v1243_v46 = vpop.f32.mrb[1].mxu1  ;;  %v360_v51 = vmul.f32 0.03125, %v326_v45 }
 0x242   :  { %v367_v36 = vadd.f32 1e-05, %v360_v51 }
 0x243   :  { %v331_v26 = vpop.f32.mrb[2].mxu1 }
 0x244   :  { %v1246_v47 = vpop.f32.mrb[3].mxu1  ;;  %v361_v56 = vmul.f32 0.03125, %v331_v26  ;;  %1414 = vrsqrt.f32 %v367_v36 }
 0x246   :  { %v368_v37 = vadd.f32 1e-05, %v361_v56 }
 0x247   :  { %v336_v50 = vpop.f32.mrb[4].mxu1 }
 0x248   :  { %v1249_v27 = vpop.f32.mrb[5].mxu1  ;;  %v362_v61 = vmul.f32 0.03125, %v336_v50  ;;  %1416 = vrsqrt.f32 %v368_v37 }
 0x24a   :  { %v369_v41 = vadd.f32 1e-05, %v362_v61 }
 0x24b   :  { %v341_v57 = vpop.f32.mrb[6].mxu1 }
 0x24c   :  { %v1252_v59 = vpop.f32.mrb[7].mxu1  ;;  %v363_v62 = vmul.f32 0.03125, %v341_v57  ;;  %1418 = vrsqrt.f32 %v369_v41 }
 0x24e   :  { %v370_v2 = vadd.f32 1e-05, %v363_v62  ;;  %v1415_v11 = vpop.eup %1414 }
 0x24f   :  { %v346_v28 = vpop.f32.mrb[8].mxu1  ;;  %v381_v14 = vmul.f32 %v1415_v11, %v1874_v35  ;;  %v1955_v35 = vld [vmem:[%s2020_s4] ss:$0 sm:$0xff] }
 0x250   :  { %v1255_v40 = vpop.f32.mrb[9].mxu1  ;;  %v364_v6 = vmul.f32 0.03125, %v346_v28  ;;  %1420 = vrsqrt.f32 %v370_v2  ;;  %v704_v33 = vadd.f32 %v1928_v54, %v1955_v35  ;;  %v707_v51 = vadd.f32 %v1930_v4, %v1955_v35 }
 0x251   :  { %v394_v32 = vmul.f32 %v1943_v15, %v381_v14  ;;  %v712_v4 = vadd.f32 %v1932_v13, %v1955_v35 }
 0x252   :  { %v1417_v48 = vpop.eup %1416  ;;  %v371_v49 = vadd.f32 1e-05, %v364_v6 }
 0x253   :  { %v351_v63 = vpop.f32.mrb[10].mxu1  ;;  %v382_v17 = vmul.f32 %v1417_v48, %v1879_v44  ;;  %v1960_v44 = vld [vmem:[%s2017_s1] ss:$0 sm:$0xff]  ;;  %v715_v48 = vadd.f32 %v1934_v9, %v1955_v35  ;;  %s1607_s1 = smov [#allocation13]  }
 0x254   :  { %v1258_v29 = vpop.f32.mrb[11].mxu1  ;;  %v365_v30 = vmul.f32 0.03125, %v351_v63  ;;  %1422 = vrsqrt.f32 %v371_v49  ;;  %v407_v39 = vadd.f32 %v1960_v44, %v394_v32  ;;  %s965_s4 = sshll.u32 %s1607_s1, 4  ;;  %s966_s4 = int_to_ptr.vmem [resolvable:$true] %s965_s4 }
 0x255   :  { %v395_v18 = vmul.f32 %v1943_v15, %v382_v17  ;;  %s1560_s5 = scalar_lea.vmem %s966_s4, 896  ;;  %p1565_p7 = scmp.lt.s32.totalorder %s966_s4, %s966_s4 }
 0x256   :  { %v372_v52 = vadd.f32 1e-05, %v365_v30  ;;  %v1419_v58 = vpop.eup %1418  ;;  %p1561_p6 = scmp.ne.s32.totalorder %s966_s4, %s1560_s5  ;;  %p1566_p8 = scmp.lt.s32.totalorder %s1560_s5, %s1560_s5 }
 0x257   :  { %v356_v3 = vpop.f32.mrb[12].mxu1  ;;  %v383_v43 = vmul.f32 %v1419_v58, %v1886_v55  ;;  %v408_v46 = vadd.f32 %v1960_v44, %v395_v18 }
 0x258   :  { %v1261_v8 = vpop.f32.mrb[13].mxu1  ;;  %v366_v53 = vmul.f32 0.03125, %v356_v3  ;;  %1424 = vrsqrt.f32 %v372_v52  ;;  %p1567_p9 = por %p1566_p8, %p1565_p7 }
 0x259   :  { %v396_v57 = vmul.f32 %v1943_v15, %v383_v43 }
 0x25a   :  { %v1421_v5 = vpop.eup %1420  ;;  %v373_v25 = vadd.f32 1e-05, %v366_v53  ;;  %p1568_p10 = pnand %p1567_p9, %p1561_p6 }
 0x25b   :  { %v384_v50 = vmul.f32 %v1421_v5, %v1893_v60  ;;  %v409_v63 = vadd.f32 %v1960_v44, %v396_v57 }
 0x25c   :  { %1426 = vrsqrt.f32 %v373_v25 }
 0x25d   :  { %v397_v40 = vmul.f32 %v1943_v15, %v384_v50 }
 0x25e   :  { %v1423_v37 = vpop.eup %1422 }
 0x25f   :  { %v1132_v31 = vpop.f32.mrb[16].mxu1  ;;  %v385_v2 = vmul.f32 %v1423_v37, %v1900_v0  ;;  %v410_v6 = vadd.f32 %v1960_v44, %v397_v40 }
 0x260   :  { %v1133_v1 = vpop.f32.mrb[17].mxu1 }
 0x261   :  { %v1134_v21 = vadd.f32 %v1133_v1, %v1132_v31  ;;  %v1135_v22 = vpop.f32.mrb[18].mxu1  ;;  %v398_v52 = vmul.f32 %v1943_v15, %v385_v2 }
 0x262   :  { %v1136_v7 = vpop.f32.mrb[19].mxu1  ;;  %v1425_v62 = vpop.eup %1424 }
 0x263   :  { %v903_v23 = vadd.f32 %v1134_v21, %v1949_v19  ;;  %v1137_v20 = vadd.f32 %v1136_v7, %v1135_v22  ;;  %v386_v30 = vmul.f32 %v1425_v62, %v1907_v12  ;;  %v720_v12 = vadd.f32 %v1936_v10, %v1955_v35 }
 0x264   :  { %v411_v9 = vadd.f32 %v1960_v44, %v398_v52 }
 0x265   :  { %v932_v42 = vadd.f32 1.0, %v903_v23  ;;  %v906_v34 = vadd.f32 %v1137_v20, %v1949_v19  ;;  %v399_v21 = vmul.f32 %v1943_v15, %v386_v30 }
 0x266   :  { %v1427_v53 = vpop.eup %1426 }
 0x267   :  { %v939_v45 = vmul.f32 %v932_v42, %v407_v39  ;;  %v933_v26 = vadd.f32 1.0, %v906_v34  ;;  %v1138_v47 = vpop.f32.mrb[20].mxu1  ;;  %v387_v23 = vmul.f32 %v1427_v53, %v1914_v16  ;;  %v412_v20 = vadd.f32 %v1960_v44, %v399_v21 }
 0x268   :  { %v1139_v27 = vpop.f32.mrb[21].mxu1 }
 0x269   :  { %v946_v54 = vadd.f32 %v939_v45, %v704_v33  ;;  %v940_v56 = vmul.f32 %v933_v26, %v408_v46  ;;  %v1140_v36 = vadd.f32 %v1139_v27, %v1138_v47  ;;  %v1141_v59 = vpop.f32.mrb[22].mxu1  ;;  %v723_v33 = vadd.f32 %v1938_v38, %v1955_v35 }
 0x26a   :  { %v1142_v55 = vpop.f32.mrb[23].mxu1  ;;  %v400_v10 = vmul.f32 %v1943_v15, %v387_v23 }
 0x26b   :  { %953 = vst [vmem:[#allocation13] sm:$0xff] %v946_v54  ;;  %v947_v28 = vadd.f32 %v940_v56, %v707_v51  ;;  %v911_v61 = vadd.f32 %v1140_v36, %v1949_v19  ;;  %v1143_v60 = vadd.f32 %v1142_v55, %v1141_v59  ;;  %v728_v51 = vadd.f32 %v1940_v24, %v1955_v35 }
 0x26c   :  { %v413_v47 = vadd.f32 %v1960_v44, %v400_v10 }
 0x26d   :  { %954 = vst [vmem:[#allocation13 + $0x8] sm:$0xff] %v947_v28  ;;  %v934_v41 = vadd.f32 1.0, %v911_v61  ;;  %v914_v29 = vadd.f32 %v1143_v60, %v1949_v19 }
 0x26f   :  { %v941_v3 = vmul.f32 %v934_v41, %v409_v63  ;;  %v935_v8 = vadd.f32 1.0, %v914_v29  ;;  %v1144_v11 = vpop.f32.mrb[24].mxu1 }
 0x270   :  { %v1145_v49 = vpop.f32.mrb[25].mxu1 }
 0x271   :  { %v948_v13 = vadd.f32 %v941_v3, %v712_v4  ;;  %v942_v14 = vmul.f32 %v935_v8, %v410_v6  ;;  %v1146_v31 = vadd.f32 %v1145_v49, %v1144_v11  ;;  %v1147_v17 = vpop.f32.mrb[26].mxu1 }
 0x272   :  { %v1148_v1 = vpop.f32.mrb[27].mxu1 }
 0x273   :  { %955 = vst [vmem:[#allocation13 + $0x10] sm:$0xff] %v948_v13  ;;  %v949_v0 = vadd.f32 %v942_v14, %v715_v48  ;;  %v919_v32 = vadd.f32 %v1146_v31, %v1949_v19  ;;  %v1149_v22 = vadd.f32 %v1148_v1, %v1147_v17 }
 0x275   :  { %956 = vst [vmem:[#allocation13 + $0x18] sm:$0xff] %v949_v0  ;;  %v936_v58 = vadd.f32 1.0, %v919_v32  ;;  %v922_v7 = vadd.f32 %v1149_v22, %v1949_v19 }
 0x277   :  { %v943_v18 = vmul.f32 %v936_v58, %v411_v9  ;;  %v937_v5 = vadd.f32 1.0, %v922_v7  ;;  %v1150_v25 = vpop.f32.mrb[28].mxu1 }
 0x278   :  { %v1151_v39 = vpop.f32.mrb[29].mxu1 }
 0x279   :  { %v950_v42 = vadd.f32 %v943_v18, %v720_v12  ;;  %v944_v34 = vmul.f32 %v937_v5, %v412_v20  ;;  %v1152_v43 = vadd.f32 %v1151_v39, %v1150_v25  ;;  %v1153_v45 = vpop.f32.mrb[30].mxu1 }
 0x27a   :  { %v1154_v46 = vpop.f32.mrb[31].mxu1 }
 0x27b   :  { %957 = vst [vmem:[#allocation13 + $0x20] sm:$0xff] %v950_v42  ;;  %v951_v26 = vadd.f32 %v944_v34, %v723_v33  ;;  %v927_v16 = vadd.f32 %v1152_v43, %v1949_v19 }
 0x27d   :  { %958 = vst [vmem:[#allocation13 + $0x28] sm:$0xff] %v951_v26  ;;  %v938_v50 = vadd.f32 1.0, %v927_v16 }
 0x27f   :  { %v945_v38 = vmul.f32 %v938_v50, %v413_v47 }
 0x281   :  { %v952_v27 = vadd.f32 %v945_v38, %v728_v51 }
 0x283   :  { %959 = vst [vmem:[#allocation13 + $0x30] sm:$0xff] %v952_v27 }
 0x284   :  { %1571 = shalt.err (!%p1568_p10)
}
 0x285   :  { %s1572_s11 = scalar_lea.hbm %s2025_s9, 896 }
 0x286   :  { %p1573_p11 = scmp.ne.s32.totalorder %s2025_s9, %s1572_s11  ;;  %p1576_p12 = scmp.lt.u32.totalorder %s1572_s11, %s2025_s9 }
 0x288   :  { %p1578_p13 = pnand %p1576_p12, %p1573_p11 }
 0x28a   :  { %1581 = shalt.err (!%p1578_p13)
}
 0x28b   :  { %971 = dma.vmem_to_hbm [thread:$0]  %s966_s4, 896, %s2025_s9, [#allocation4], %s1596_s2, %s1596_s2, %s1597_s10  }
 0x28c   :  { %1590 = dma.done.wait [#allocation4], 896  }
 0x28d   :  { %1591 = vsyncadd [#allocation4], 4294966400 }
 0x28e   :  { %975 = vsyncpa [#allocation3], 1 }
 0x28f   :  { %976 = vsyncpa [#allocation6], 1 }
 0x290   :  { %977 = vsyncpa [#allocation9], 1 }
 0x291   :  { %978 = vsyncpa [#allocation12], 1 }
 0x292   :  { %979 = vsyncpa [#allocation4], 1 }

</bundles_post_ra>
